<compile_context>
chip_gen: v7x
topology: tpu7x:2x2x1
jax: 0.10.0
libtpu: 0.0.40
codegen_flags: <defaults>
</compile_context>

<pallas_src>
import jax
import jax.numpy as jnp
from jax.experimental import pallas as pl
from jax.experimental.pallas import tpu as pltpu


def _converge_kernel(patch_ref, w_ref, b_ref, o_ref):
    # patch_ref: (J*Cpatch, TS) bf16   w_ref: (J*r2, J*Cpatch) bf16
    # b_ref:     (J*r2, 1)      f32    o_ref: (J*r2, TS)       f32
    o_ref[...] = (
        jnp.dot(w_ref[...], patch_ref[...], preferred_element_type=jnp.float32)
        + b_ref[...]
    )


def converge_head_forward(x, weight, bias, *, in_dim, up_ratio, kernel_size,
                          padding, num_joints):
    """x: (N, num_joints*in_dim, H, W) NCHW
    weight: (up_ratio^2*num_joints, in_dim, K, K)  (PyTorch grouped-conv layout)
    bias:   (up_ratio^2*num_joints,)
    returns (N, num_joints, Ho*up_ratio, Wo*up_ratio)"""
    N, C, H, W = x.shape
    J, Cin, K, r = num_joints, in_dim, kernel_size, up_ratio
    r2 = r * r
    assert C == J * Cin
    Ho = H + 2 * padding - K + 1
    Wo = W + 2 * padding - K + 1
    HoWo = Ho * Wo
    Cpatch = Cin * K * K
    Mrows = J * r2           # output channels of grouped conv (matmul M)
    Krows = J * Cpatch       # contraction dim of block-diagonal matmul

    # ---- glue: group split, pad, im2col (bf16, data rearrangement only) ----
    # TODO(synk): move im2col inside the kernel (accumulate over the K*K taps
    # straight from the padded input in VMEM) to avoid materializing the
    # K^2-duplicated patch array in HBM for production-size inputs.
    xg = x.astype(jnp.bfloat16).reshape(N, J, Cin, H, W)
    xp = jnp.pad(xg, ((0, 0), (0, 0), (0, 0),
                      (padding, padding), (padding, padding)))
    cols = []
    for ki in range(K):
        for kj in range(K):
            cols.append(xp[:, :, :, ki:ki + Ho, kj:kj + Wo])
    # patch row ordering per joint: (ki, kj, cin); joints stacked row-major.
    patches = jnp.concatenate(cols, axis=2).reshape(N, Krows, HoWo)

    # weight (J*r2, Cin, K, K) -> per-joint (J, r2, K*K*Cin) matching the
    # (ki, kj, cin) patch-row ordering, then block-diagonal (J*r2, J*Cpatch)
    # so all joints become ONE matmul with M = J*r2 sublanes.
    w_per = (weight.astype(jnp.float32)
             .reshape(J, r2, Cin, K, K)
             .transpose(0, 1, 3, 4, 2)
             .reshape(J, r2, Cpatch))
    eye = jnp.eye(J, dtype=jnp.float32)
    w_bd = (jnp.einsum('jrc,jg->jrgc', w_per, eye)
            .reshape(Mrows, Krows)
            .astype(jnp.bfloat16))
    b_mat = bias.astype(jnp.float32).reshape(Mrows, 1)

    # ---- spatial tiling: lane-dense tiles with a bounded VMEM footprint ----
    bytes_per_lane = 2 * (Krows * 2) + 2 * (Mrows * 4)   # dbl-buffered in+out
    budget = 16 * 1024 * 1024
    ts_cap = max(128, min(16384, (budget // bytes_per_lane) // 128 * 128))
    TS = HoWo if HoWo <= ts_cap else ts_cap
    n_tiles = pl.cdiv(HoWo, TS)

    out = pl.pallas_call(
        _converge_kernel,
        out_shape=jax.ShapeDtypeStruct((N, Mrows, HoWo), jnp.float32),
        grid_spec=pltpu.PrefetchScalarGridSpec(
            num_scalar_prefetch=0,
            grid=(N, n_tiles),
            in_specs=[
                pl.BlockSpec((None, Krows, TS), lambda n, s: (n, 0, s)),
                # weight / bias: constant index_map -> resident, no re-DMA
                pl.BlockSpec((Mrows, Krows), lambda n, s: (0, 0)),
                pl.BlockSpec((Mrows, 1), lambda n, s: (0, 0)),
            ],
            out_specs=pl.BlockSpec((None, Mrows, TS), lambda n, s: (n, 0, s)),
        ),
        compiler_params=pltpu.CompilerParams(
            dimension_semantics=("parallel", "parallel"),
            vmem_limit_bytes=32 * 1024 * 1024),
    )(patches, w_bd, b_mat)

    # ---- pixel_shuffle (reshape/transpose glue) -----------------------------
    # out[n, j*r2 + i1*r + i2, ho*Wo + wo] -> hp[n, j, ho*r + i1, wo*r + i2]
    # TODO(synk): fuse this rearrangement into the kernel epilogue to save one
    # output-sized HBM round trip at production sizes.
    hp = out.reshape(N, J, r, r, Ho, Wo).transpose(0, 1, 4, 2, 5, 3)
    return hp.reshape(N, J, Ho * r, Wo * r)


def _reference(x, weight, bias, *, up_ratio, num_joints, padding):
    """Pure-JAX f32 reference: grouped conv + pixel_shuffle."""
    conv = jax.lax.conv_general_dilated(
        x.astype(jnp.float32), weight.astype(jnp.float32),
        window_strides=(1, 1),
        padding=[(padding, padding), (padding, padding)],
        dimension_numbers=("NCHW", "OIHW", "NCHW"),
        feature_group_count=num_joints)
    conv = conv + bias.astype(jnp.float32)[None, :, None, None]
    N, C, Ho, Wo = conv.shape
    r = up_ratio
    J = C // (r * r)
    hp = conv.reshape(N, J, r, r, Ho, Wo).transpose(0, 1, 4, 2, 5, 3)
    return hp.reshape(N, J, Ho * r, Wo * r)


if __name__ == "__main__":
    # Module hyper-params (small, consistent with ConvergeHead.__init__)
    in_dim = 4
    up_ratio = 2
    kernel_size = 3
    padding = 1
    num_joints = 4

    N, H, W = 2, 16, 16
    C_in = in_dim * num_joints              # 16
    C_out = up_ratio ** 2 * num_joints      # 16

    key = jax.random.PRNGKey(0)
    kx, kw = jax.random.split(key)
    x = jax.random.normal(kx, (N, C_in, H, W), dtype=jnp.float32)

    # Deterministic parameter init matching _init_weights:
    #   conv weight ~ N(0, 0.001^2), bias = 0
    weight = 0.001 * jax.random.normal(
        kw, (C_out, in_dim, kernel_size, kernel_size), dtype=jnp.float32)
    bias = jnp.zeros((C_out,), dtype=jnp.float32)

    hp = converge_head_forward(
        x, weight, bias,
        in_dim=in_dim, up_ratio=up_ratio, kernel_size=kernel_size,
        padding=padding, num_joints=num_joints)
    hp = jax.block_until_ready(hp)

    ref = _reference(x, weight, bias, up_ratio=up_ratio,
                     num_joints=num_joints, padding=padding)
    assert hp.shape == (N, num_joints, H * up_ratio, W * up_ratio), hp.shape
    # bf16 matmul inputs -> loosened tolerance vs the f32 reference.
    assert jnp.allclose(hp, ref, atol=5e-4, rtol=2e-2), \
        float(jnp.max(jnp.abs(hp - ref)))

    print("KERNEL_OK")
</pallas_src>

<mosaic_0001>
module attributes {stable_mosaic.version = 11 : i64} {
  func.func @_converge_kernel(%arg0: i32, %arg1: i32, %arg2: memref<1x144x256xbf16, #tpu.memory_space<vmem>>, %arg3: memref<16x144xbf16, #tpu.memory_space<vmem>>, %arg4: memref<16x1xf32, #tpu.memory_space<vmem>>, %arg5: memref<1x16x256xf32, #tpu.memory_space<vmem>>) attributes {dimension_semantics = [#tpu.dimension_semantics<parallel>, #tpu.dimension_semantics<parallel>], iteration_bounds = array<i64: 2, 1>, scalar_prefetch = 0 : i64, scratch_operands = 0 : i64, tpu.core_type = #tpu.core_type<tc>, window_params = [{transform_indices = @transform_0, window_bounds = array<i64: 1, 144, 256>}, {pipeline_mode = #tpu.pipeline_mode<synchronous>, transform_indices = @transform_1, window_bounds = array<i64: 16, 144>}, {pipeline_mode = #tpu.pipeline_mode<synchronous>, transform_indices = @transform_2, window_bounds = array<i64: 16, 1>}, {transform_indices = @transform_3, window_bounds = array<i64: 1, 16, 256>}]} {
    %c0 = arith.constant 0 : index
    %c0_0 = arith.constant 0 : index
    %0 = vector.load %arg3[%c0, %c0_0] : memref<16x144xbf16, #tpu.memory_space<vmem>>, vector<16x144xbf16>
    %c0_1 = arith.constant 0 : index
    %c0_2 = arith.constant 0 : index
    %c0_3 = arith.constant 0 : index
    %1 = vector.load %arg2[%c0_1, %c0_2, %c0_3] : memref<1x144x256xbf16, #tpu.memory_space<vmem>>, vector<1x144x256xbf16>
    %2 = vector.shape_cast %1 : vector<1x144x256xbf16> to vector<144x256xbf16>
    %cst = arith.constant dense<0.000000e+00> : vector<16x256xf32>
    %3 = tpu.matmul %0, %2, %cst {dimension_numbers = #tpu.dot_dimension_numbers<[1], [0], [0], [1], [0, 0, 1, 1], [], []>} : vector<16x144xbf16>, vector<144x256xbf16>, vector<16x256xf32> -> vector<16x256xf32>
    %c0_4 = arith.constant 0 : index
    %c0_5 = arith.constant 0 : index
    %4 = vector.load %arg4[%c0_4, %c0_5] : memref<16x1xf32, #tpu.memory_space<vmem>>, vector<16x1xf32>
    %5 = vector.broadcast %4 : vector<16x1xf32> to vector<16x256xf32>
    %6 = arith.addf %3, %5 : vector<16x256xf32>
    %c0_6 = arith.constant 0 : index
    %c0_7 = arith.constant 0 : index
    %c0_8 = arith.constant 0 : index
    %7 = vector.load %arg5[%c0_6, %c0_7, %c0_8] : memref<1x16x256xf32, #tpu.memory_space<vmem>>, vector<1x16x256xf32>
    %8 = vector.shape_cast %7 : vector<1x16x256xf32> to vector<16x256xf32>
    %9 = vector.shape_cast %6 : vector<16x256xf32> to vector<1x16x256xf32>
    tpu.vector_store %arg5[%c0_6, %c0_7, %c0_8], %9 {strides = array<i32>} : memref<1x16x256xf32, #tpu.memory_space<vmem>>, vector<1x16x256xf32>,
    return
  }
  func.func @transform_0(%arg0: i32, %arg1: i32) -> (i32, i32, i32) {
    %c0_i32 = arith.constant 0 : i32
    %c0_i32_0 = arith.constant 0 : i32
    return %arg0, %c0_i32, %arg1 : i32, i32, i32
  }
  func.func @transform_1(%arg0: i32, %arg1: i32) -> (i32, i32) {
    %c0_i32 = arith.constant 0 : i32
    %c0_i32_0 = arith.constant 0 : i32
    %c0_i32_1 = arith.constant 0 : i32
    return %c0_i32, %c0_i32_0 : i32, i32
  }
  func.func @transform_2(%arg0: i32, %arg1: i32) -> (i32, i32) {
    %c0_i32 = arith.constant 0 : i32
    %c0_i32_0 = arith.constant 0 : i32
    %c0_i32_1 = arith.constant 0 : i32
    return %c0_i32, %c0_i32_0 : i32, i32
  }
  func.func @transform_3(%arg0: i32, %arg1: i32) -> (i32, i32, i32) {
    %c0_i32 = arith.constant 0 : i32
    %c0_i32_0 = arith.constant 0 : i32
    return %arg0, %c0_i32, %arg1 : i32, i32, i32
  }
}

</mosaic_0001>

<bundles_post_ra>
// kernel: tpu_custom_call.1
= control target key start
LH: loop header
LB: loop body
LE: loop exit
PB: predicated region body
PF: predicated region fallthrough
CT: control target
= control target key end

     0   :  { %8 = vsyncpa [#allocation3], 0  ;;  %s979_s0 = inlined_call_operand.hbm [shape: bf16[2,144,256], index: 0, kind: input, shape index: {}]   ;;  %s980_s1 = inlined_call_operand.vmem [shape: bf16[16,144], index: 1, kind: input, shape index: {}]   ;;  %s981_s2 = inlined_call_operand.vmem [shape: f32[16,1], index: 2, kind: input, shape index: {}]   ;;  %s982_s3 = inlined_call_operand.hbm [shape: f32[2,16,256], index: 3, kind: output, shape index: {}]  }
   0x1   :  { %10 = vsyncpa [#allocation3 + $0x1], 0 }
   0x2   :  { %11 = vsyncpa [#allocation4], 0 }
   0x3   :  { %13 = vsyncpa [#allocation4 + $0x1], 0  ;;  %s771_s12 = smov 0   ;;  %s773_s13 = smov 0  }
   0x4   :  { %s775_s14 = smov 0   ;;  %s777_s15 = smov 0  }
   0x5   :  { %s779_s16 = smov 0   ;;  %s781_s17 = smov 0  }
   0x6 LB: > { %s495_s18 = sadd.s32 4294967295, %s742_s17   ;;  %s496_s19 = sadd.s32 4294967294, %s742_s17   ;;  %s742_s17 = sphi %s781_s17, %s19_s17   ;;  %s738_s16 = sphi %s779_s16, %s997_s16   ;;  %s734_s15 = sphi %s777_s15, %s996_s15   ;;  %s730_s14 = sphi %s775_s14, %s995_s14   ;;  %s726_s13 = sphi %s773_s13, %s994_s13   ;;  %s722_s12 = sphi %s771_s12, %s993_s12  }
   0x7   : > { %s31_s20 = sadd.s32 1, %s738_s16  ;;  %s40_s21 = sadd.s32 1, %s730_s14 }
   0x8   : > { %p33_p0 = scmp.ge.s32.totalorder %s31_s20, 2  ;;  %p47_p1 = scmp.ne.s32.totalorder %s730_s14, %s726_s13 }
   0x9   : > { %p48_p2 = scmp.eq.s32.totalorder %s742_s17, 0  ;;  %p53_p3 = scmp.ne.s32.totalorder %s726_s13, %s722_s12 }
   0xa   : > { %s999_s20 = smov (%p33_p0, %s31_s20), 0  ;;  %p54_p5 = scmp.eq.s32.totalorder %s495_s18, 0 }
   0xb   : > { %p812_p4 = por %p48_p2, %p47_p1  ;;  %s35_s23 = ssub.s32 %s738_s16, %s999_s20 }
   0xc   : > { %p121_p6 = scmp.eq.s32.totalorder %s495_s18, 1  ;;  %p38_p7 = scmp.eq.s32.totalorder %s35_s23, 0 }
   0xd   : > { %p818_p8 = por %p54_p5, %p53_p3  ;;  %p127_p10 = scmp.eq.s32.totalorder %s496_s19, 1 }
   0xe   : > { %p822_p9 = por %p121_p6, %p47_p1  ;;  %p544_p13 = scmp.lt.s32.totalorder %s742_s17, 2 }
   0xf   : > { %s827_s26 = scalar_select %p38_p7, %s730_s14, %s40_s21  }
  0x10   : > { %s986_s25 = scalar_select %p822_p9, 1, 0 }
  0x11   : > { %p829_p11 = por %p127_p10, %p53_p3  ;;  %s153_s28 = sand.u32 1, %s730_s14  }
  0x12   : > { %s529_s29 = smul.u32 144, %s153_s28  ;;  %p839_p0 = pnand %p544_p13, %p812_p4 }
  0x13   : > { %s987_s27 = scalar_select %p829_p11, 1, 0 }
  0x14   : > { %s530_s30 = smul.u32 2304, %s738_s16  ;;  %s157_s8 = scalar_lea.vmem [#allocation2], %s529_s29 }
  0x15   : > { %s166_s9 = sshll.u32 %s157_s8, 4  ;;  %s851_s10 = scalar_lea.sflag [#allocation3], %s153_s28  ;;  %s848_s9 = int_to_ptr.vmem [resolvable:$true] %s166_s9 }
  0x16   : > { %s846_s7 = scalar_lea.hbm %s979_s0, %s530_s30  ;;  %p632_p3 = pneg %p839_p0 }
  0x17   : > { %s630_s11 = scalar_lea.hbm %s846_s7, 2304  ;;  %s635_s21 = scalar_lea.hbm %s979_s0, 4608 }
  0x18   : > { %p631_p2 = scmp.ne.s32.totalorder %s846_s7, %s630_s11  ;;  %p636_p6 = scmp.lt.u32.totalorder %s846_s7, %s979_s0 }
  0x19   : > { %p637_p7 = scmp.lt.u32.totalorder %s635_s21, %s630_s11  ;;  %p639_p13 = scmp.lt.u32.totalorder %s630_s11, %s846_s7 }
  0x1a   : > { %p633_p4 = pnand %p632_p3, %p631_p2 }
  0x1b   : > { %p638_p10 = por %p637_p7, %p636_p6 }
  0x1c   : > { %p634_p5 = pneg %p633_p4 }
  0x1d   : > { %p640_p12 = por %p639_p13, %p638_p10 }
  0x1f   : > { %p641_p1 = pnand %p640_p12, %p634_p5 }
  0x21   : > { %644 = shalt.err (!%p641_p1)
}
  0x22   : > { %s645_s28 = scalar_lea.vmem %s848_s9, 2304  ;;  %s744_s29 = smov [#allocation2]  }
  0x23   : > { %p646_p2 = scmp.ne.s32.totalorder %s848_s9, %s645_s28  ;;  %s650_s30 = sshll.u32 %s744_s29, 4  ;;  %s651_s30 = int_to_ptr.vmem [resolvable:$false] %s650_s30 }
  0x24   : > { %s652_s5 = scalar_lea.vmem %s651_s30, 4608  ;;  %p653_p9 = scmp.lt.s32.totalorder %s848_s9, %s651_s30 }
  0x25   : > { %p648_p4 = pnand %p646_p2, %p632_p3  ;;  %p654_p6 = scmp.lt.s32.totalorder %s652_s5, %s645_s28 }
  0x27   : > { %p649_p11 = pneg %p648_p4  ;;  %p655_p7 = por %p654_p6, %p653_p9 }
  0x29   : > { %p656_p10 = pnand %p655_p7, %p649_p11 }
  0x2b   : > { %659 = shalt.err (!%p656_p10)
}
  0x2c   : > { %s745_s6 = smov 128   ;;  %s746_s8 = smov 8  }
  0x2d   : > { %539 = dma.hbm_to_vmem [thread:$0]  (!%p839_p0), %s846_s7, 2304, %s848_s9, %s851_s10, %s745_s6, %s745_s6, %s746_s8  }
  0x2e   : > { %p174_p12 = scmp.lt.s32.totalorder %s742_s17, 3  ;;  %p989_p1 = scmp.ge.s32.totalorder %s742_s17, 1 }
  0x30   : > { %p175_p3 = pnand %p989_p1, %p174_p12 }
  0x31   : > { %s883_s11 = sand.u32 (!%p175_p3), 1, %s726_s13  }
  0x32   : > { %178 = sbr.rel (%p175_p3) target bundleno = 327 (0x147), region = 32  ;;  %s181_s19 = scalar_lea.sflag (!%p175_p3), [#allocation3], %s883_s11 }
  0x33   : > { %s531_s18 = smul.u32 (!%p175_p3), 144, %s883_s11 }
  0x35   : > { %s887_s21 = scalar_lea.vmem (!%p175_p3), [#allocation2], %s531_s18 }
  0x39   : > { %713 = dma.done.wait (%p818_p8), %s181_s19, 2304  }
  0x3a   : > { %715 = vsyncadd (%p818_p8), %s181_s19, 4294964992  ;;  %v747_v0 = vmov 0   ;;  %v600_v1 = vld [vmem:[%s887_s21 + $0x4] ss:$8 sps:$4 sm:$0xff]   ;;  %v602_v2 = vld [vmem:[%s887_s21] ss:$8 sps:$4 sm:$0xff]  }
  0x3b   : > { %599 = vset.pattern.permute.xlu0 %v747_v0  ;;  %345 = vmatprep.subr.bf16.mxu0 %v600_v1  ;;  %v603_v3 = vld [vmem:[%s887_s21 + $0x14] ss:$8 sps:$4 sm:$0xff]   ;;  %v605_v4 = vld [vmem:[%s887_s21 + $0x10] ss:$8 sps:$4 sm:$0xff]   ;;  %v606_v5 = vld [vmem:[%s887_s21 + $0x24] ss:$8 sps:$4 sm:$0xff]  }
  0x3c   : > { %346 = vmatpush1.bf16.msra.mxu0 %v602_v2  ;;  %v608_v6 = vld [vmem:[%s887_s21 + $0x20] ss:$8 sps:$4 sm:$0xff]   ;;  %v609_v7 = vld [vmem:[%s887_s21 + $0x34] ss:$8 sps:$4 sm:$0xff]   ;;  %v611_v8 = vld [vmem:[%s887_s21 + $0x30] ss:$8 sps:$4 sm:$0xff]  }
  0x3d   : > { %347 = vmatprep.subr.bf16.mxu0 %v603_v3  ;;  %v612_v9 = vld [vmem:[%s887_s21 + $0x44] ss:$8 sps:$4 sm:$0xff]   ;;  %vm341_vm0 = vcmask 130048   ;;  %v614_v12 = vld [vmem:[%s887_s21 + $0x40] ss:$8 sps:$4 sm:$0xff]   ;;  %s501_s29 = sshll.u32 %s883_s11, 5 }
  0x3e   : > { %v629_v10 = vld [vmem:[%s980_s1 + $0x4] ss:$8 sps:$4 sm:$0xff]   ;;  %v617_v15 = vld [vmem:[%s887_s21 + $0x50] ss:$8 sps:$4 sm:$0xff]   ;;  %v620_v17 = vld [vmem:[%s887_s21 + $0x60] ss:$8 sps:$4 sm:$0xff]  }
  0x3f   : > { %v230_v11 = vld [vmem:[%s981_s2] sm:$0xff]  ;;  %522 = vmatprep.mubr.msk.bf16.mxu0 %vm341_vm0, %v629_v10  ;;  %v231_v13 = vld [vmem:[%s981_s2 + $0x8] sm:$0xff]  ;;  %s206_s30 = scalar_lea.vmem [#allocation5], %s501_s29  ;;  %s528_s6 = sshll.u32 %s734_s15, 9 }
  0x40   : > { %348 = vmatpush1.bf16.msra.mxu0 %v605_v4  ;;  %234 = vperm.xlu0 %599, %v230_v11   ;;  %v615_v14 = vld [vmem:[%s887_s21 + $0x54] ss:$8 sps:$4 sm:$0xff]   ;;  %v618_v16 = vld [vmem:[%s887_s21 + $0x64] ss:$8 sps:$4 sm:$0xff]   ;;  %v623_v19 = vld [vmem:[%s887_s21 + $0x70] ss:$8 sps:$4 sm:$0xff]   ;;  %s930_s19 = scalar_lea.hbm %s982_s3, %s528_s6 }
  0x41   : > { %349 = vmatprep.subr.bf16.mxu0 %v606_v5  ;;  %v621_v18 = vld [vmem:[%s887_s21 + $0x74] ss:$8 sps:$4 sm:$0xff]   ;;  %v624_v20 = vld [vmem:[%s887_s21 + $0x84] ss:$8 sps:$4 sm:$0xff]   ;;  %v626_v21 = vld [vmem:[%s887_s21 + $0x80] ss:$8 sps:$4 sm:$0xff]  }
  0x42   : > { %v627_v22 = vld [vmem:[%s980_s1] ss:$8 sps:$4 sm:$0xff]   ;;  %s408_s5 = sshll.u32 %s206_s30, 4  ;;  %s393_s15 = scalar_lea.sflag [#allocation4], %s883_s11  ;;  %s925_s5 = int_to_ptr.vmem [resolvable:$true] %s408_s5 }
  0x43   : > { %s660_s21 = scalar_lea.vmem %s925_s5, 512  ;;  %p990_p9 = scmp.ne.s32.totalorder %s986_s25, 0 }
  0x44   : > { %350 = vmatpush1.bf16.msra.mxu0 %v608_v6  ;;  %239 = vperm.xlu0 %599, %v231_v13   ;;  %p661_p8 = scmp.ne.s32.totalorder %s925_s5, %s660_s21  ;;  %s748_s24 = smov [#allocation5]  }
  0x45   : > { %351 = vmatprep.subr.bf16.mxu0 %v609_v7  ;;  %s664_s4 = sshll.u32 %s748_s24, 4  ;;  %s665_s4 = int_to_ptr.vmem [resolvable:$false] %s664_s4 }
  0x46   : > { %p662_p11 = pnand %p661_p8, %p990_p9  ;;  %s666_s7 = scalar_lea.vmem %s665_s4, 1024 }
  0x47   : > { %p667_p5 = scmp.lt.s32.totalorder %s925_s5, %s665_s4  ;;  %p668_p13 = scmp.lt.s32.totalorder %s666_s7, %s660_s21 }
  0x48   : > { %352 = vmatpush1.bf16.msra.mxu0 %v611_v8  ;;  %p663_p0 = pneg %p662_p11 }
  0x49   : > { %353 = vmatprep.subr.bf16.mxu0 %v612_v9  ;;  %p669_p2 = por %p668_p13, %p667_p5 }
  0x4b   : > { %p670_p4 = pnand %p669_p2, %p663_p0 }
  0x4c   : > { %354 = vmatpush1.bf16.msra.mxu0 %v614_v12 }
  0x4d   : > { %355 = vmatprep.subr.bf16.mxu0 %v615_v14 }
  0x50   : > { %356 = vmatpush1.bf16.msra.mxu0 %v617_v15 }
  0x51   : > { %357 = vmatprep.subr.bf16.mxu0 %v618_v16 }
  0x54   : > { %358 = vmatpush1.bf16.msra.mxu0 %v620_v17 }
  0x55   : > { %359 = vmatprep.subr.bf16.mxu0 %v621_v18 }
  0x58   : > { %360 = vmatpush1.bf16.msra.mxu0 %v623_v19 }
  0x59   : > { %361 = vmatprep.subr.bf16.mxu0 %v624_v20 }
  0x5c   : > { %362 = vmatpush1.bf16.msra.mxu0 %v626_v21 }
  0x5f   : > { %378 = vmatmul.mubr.bf16.vlgmr.msra.gmra.mrb[0].mxu0 %v627_v22 }
  0xbf   : > { %v235_v23 = vpop.permute.xlu0 %234 }
  0xc3   : > { %v240_v27 = vpop.permute.xlu0 %239 }
 0x132   : > { %v379_v24 = vpop.f32.mrb[0].mxu0 }
 0x133   : > { %v380_v25 = vadd.f32 %v379_v24, %v235_v23  ;;  %v381_v26 = vpop.f32.mrb[1].mxu0 }
 0x134   : > { %v382_v28 = vadd.f32 %v381_v26, %v235_v23  ;;  %v383_v29 = vpop.f32.mrb[2].mxu0 }
 0x135   : > { %388 = vst [vmem:[%s206_s30] sm:$0xff] %v380_v25  ;;  %v384_v30 = vadd.f32 %v383_v29, %v240_v27  ;;  %v385_v31 = vpop.f32.mrb[3].mxu0 }
 0x136   : > { %389 = vst [vmem:[%s206_s30 + $0x8] sm:$0xff] %v382_v28  ;;  %v386_v32 = vadd.f32 %v385_v31, %v240_v27 }
 0x137   : > { %390 = vst [vmem:[%s206_s30 + $0x10] sm:$0xff] %v384_v30 }
 0x138   : > { %391 = vst [vmem:[%s206_s30 + $0x18] sm:$0xff] %v386_v32 }
 0x139   : > { %673 = shalt.err (!%p670_p4)
}
 0x13a   : > { %s674_s9 = scalar_lea.hbm %s930_s19, 512  ;;  %s678_s23 = scalar_lea.hbm %s982_s3, 1024 }
 0x13b   : > { %p675_p6 = scmp.ne.s32.totalorder %s930_s19, %s674_s9  ;;  %p679_p12 = scmp.lt.u32.totalorder %s930_s19, %s982_s3 }
 0x13c   : > { %p680_p1 = scmp.lt.u32.totalorder %s678_s23, %s674_s9  ;;  %p682_p8 = scmp.lt.u32.totalorder %s674_s9, %s930_s19 }
 0x13d   : > { %p676_p7 = pnand %p675_p6, %p990_p9 }
 0x13e   : > { %p681_p3 = por %p680_p1, %p679_p12 }
 0x13f   : > { %p677_p10 = pneg %p676_p7 }
 0x140   : > { %p683_p11 = por %p682_p8, %p681_p3 }
 0x142   : > { %p684_p0 = pnand %p683_p11, %p677_p10 }
 0x144   : > { %687 = shalt.err (!%p684_p0)
}
 0x145   : > { %s749_s30 = smov 256   ;;  %s750_s6 = smov 16  }
 0x146   : > { %534 = dma.vmem_to_hbm [thread:$0]  (%p990_p9), %s925_s5, 512, %s930_s19, %s393_s15, %s749_s30, %s749_s30, %s750_s6  }
 0x147 PF: > { %s423_s8 = sand.u32 1, %s722_s12   ;;  %p991_p5 = scmp.ne.s32.totalorder %s987_s27, 0 }
 0x148   : > { %p992_p13 = scmp.ge.s32.totalorder %s742_s17, 2  ;;  %s424_s18 = scalar_lea.sflag [#allocation4], %s423_s8 }
 0x14a   : > { %p541_p2 = pnand %p992_p13, %p991_p5 }
 0x14c   : > { %717 = dma.done.wait (!%p541_p2), %s424_s18, 512  }
 0x14d   : > { %719 = vsyncadd (!%p541_p2), %s424_s18, 4294966784  ;;  %s19_s17 = sadd.s32 1, %s742_s17   ;;  %s993_s12 = smov %s726_s13 }
 0x14e   : > { %p16_p4 = scmp.ge.s32.totalorder %s19_s17, 4   ;;  %s994_s13 = smov %s730_s14 }
 0x14f   : > { %s995_s14 = smov %s827_s26  ;;  %s996_s15 = smov %s738_s16 }
 0x150   : > { %s997_s16 = smov %s999_s20  ;;  %18 = sbr.rel (!%p16_p4) target bundleno = 6 (0x6), region = 77 }
 0x157   :  { %429 = vsyncpa [#allocation3], 1 }
 0x158   :  { %431 = vsyncpa [#allocation3 + $0x1], 1 }
 0x159   :  { %432 = vsyncpa [#allocation4], 1 }
 0x15a   :  { %434 = vsyncpa [#allocation4 + $0x1], 1 }

</bundles_post_ra>
